<compile_context>
chip_gen: v6e
topology: v6e:2x2x1
jax: 0.10.0
libtpu: 0.0.40
codegen_flags: <defaults>
</compile_context>

<pallas_src>
import jax
import jax.numpy as jnp
import numpy as np
from jax.experimental import pallas as pl
from jax.experimental.pallas import tpu as pltpu

_VMEM_LIMIT = 32 * 1024 * 1024      # explicit scoped-VMEM budget (safe on v5e/v6e/v7x)
_TILE_ROWS = 256                    # row-tile for the matmul / affine kernels


def _round_up(x, m):
    return ((x + m - 1) // m) * m


def _largest_divisor_leq(n, target):
    t = max(1, min(n, target))
    while n % t:
        t -= 1
    return t


def _pad_rows(a, tm):
    m = a.shape[0]
    mp = _round_up(m, tm)
    if mp != m:
        a = jnp.pad(a, ((0, mp - m),) + ((0, 0),) * (a.ndim - 1))
    return a


# ----------------------------------------------------------------------------
# Kernel A: tiled im2col matmul (conv) + per-tile BN partial statistics
# ----------------------------------------------------------------------------
def _conv_stats_kernel(p_ref, w_ref, y_ref, sum_ref, ssq_ref):
    # p_ref : (TM, 9*Cin) bf16 im2col rows
    # w_ref : (9*Cin, Cout) bf16 (resident)
    # y_ref : (TM, Cout) bf16 conv output block
    # sum_ref/ssq_ref : (1, 8, Cout) f32 per-tile partial sum / sum of squares
    acc = jnp.dot(p_ref[...], w_ref[...], preferred_element_type=jnp.float32)
    y_ref[...] = acc.astype(y_ref.dtype)
    s = jnp.sum(acc, axis=0, keepdims=True)            # (1, Cout)
    ss = jnp.sum(acc * acc, axis=0, keepdims=True)     # (1, Cout)
    sum_ref[...] = jnp.broadcast_to(s, sum_ref.shape)
    ssq_ref[...] = jnp.broadcast_to(ss, ssq_ref.shape)


def _conv_bn_coeffs(patches, w9, gamma, beta, m_true, eps, tm):
    """Conv matmul + BN coefficients.  Returns (padded conv rows, scale, shift)."""
    patches = _pad_rows(patches, tm)
    mp, k = patches.shape
    c = w9.shape[1]
    n_blk = mp // tm

    y, psum, pssq = pl.pallas_call(
        _conv_stats_kernel,
        grid=(n_blk,),
        in_specs=[pl.BlockSpec((tm, k), lambda i: (i, 0)),
                  pl.BlockSpec((k, c), lambda i: (0, 0))],
        out_specs=(pl.BlockSpec((tm, c), lambda i: (i, 0)),
                   pl.BlockSpec((1, 8, c), lambda i: (i, 0, 0)),
                   pl.BlockSpec((1, 8, c), lambda i: (i, 0, 0))),
        out_shape=(jax.ShapeDtypeStruct((mp, c), jnp.bfloat16),
                   jax.ShapeDtypeStruct((n_blk, 8, c), jnp.float32),
                   jax.ShapeDtypeStruct((n_blk, 8, c), jnp.float32)),
        compiler_params=pltpu.CompilerParams(
            dimension_semantics=("parallel",),
            vmem_limit_bytes=_VMEM_LIMIT),
    )(patches, w9)

    # Tiny cross-tile reduction (zero-padded rows contribute 0 -> stats exact).
    tot = jnp.sum(psum[:, 0, :], axis=0)
    tot2 = jnp.sum(pssq[:, 0, :], axis=0)
    mean = tot / m_true
    var = jnp.maximum(tot2 / m_true - mean * mean, 0.0)   # biased variance
    scale = (gamma * jax.lax.rsqrt(var + eps)).reshape(1, c)
    shift = (beta - mean * scale[0]).reshape(1, c)
    return y, scale.astype(jnp.float32), shift.astype(jnp.float32)


# ----------------------------------------------------------------------------
# Kernel B: tiled BN affine + ReLU (intermediate layers)
# ----------------------------------------------------------------------------
def _bn_relu_kernel(y_ref, sc_ref, sh_ref, o_ref):
    z = y_ref[...].astype(jnp.float32) * sc_ref[...] + sh_ref[...]
    o_ref[...] = jnp.maximum(z, 0.0).astype(o_ref.dtype)


def _bn_relu(y, scale, shift, out_dtype, tm):
    mp, c = y.shape
    n_blk = mp // tm
    return pl.pallas_call(
        _bn_relu_kernel,
        grid=(n_blk,),
        in_specs=[pl.BlockSpec((tm, c), lambda i: (i, 0)),
                  pl.BlockSpec((1, c), lambda i: (0, 0)),
                  pl.BlockSpec((1, c), lambda i: (0, 0))],
        out_specs=pl.BlockSpec((tm, c), lambda i: (i, 0)),
        out_shape=jax.ShapeDtypeStruct((mp, c), out_dtype),
        compiler_params=pltpu.CompilerParams(
            dimension_semantics=("parallel",),
            vmem_limit_bytes=_VMEM_LIMIT),
    )(y, scale, shift)


# ----------------------------------------------------------------------------
# Kernel B' (last layer): fused BN affine + ReLU + 2x2/stride-2 max-pool with
# PyTorch flat indices (h*W + w, using the ORIGINAL input width).
# Input rows are pre-arranged as (image, window-phase, oh, ow), i.e. the 4
# candidates of every pooling window live in the leading dim of each block.
# ----------------------------------------------------------------------------
def _make_bn_relu_pool_kernel(w_in):
    def kernel(y_ref, sc_ref, sh_ref, out_ref, idx_ref):
        _, t_ho, wo, c = y_ref.shape
        z = jnp.maximum(
            y_ref[...].astype(jnp.float32) * sc_ref[...] + sh_ref[...], 0.0)
        oh = (pl.program_id(1) * t_ho
              + jax.lax.broadcasted_iota(jnp.int32, (t_ho, wo, c), 0))
        ow = jax.lax.broadcasted_iota(jnp.int32, (t_ho, wo, c), 1)
        best = z[0]                                  # phase (0, 0)
        best_idx = (2 * oh) * w_in + 2 * ow
        for p in (1, 2, 3):                          # (0,1), (1,0), (1,1)
            py, px = divmod(p, 2)
            cand = z[p]
            cidx = (2 * oh + py) * w_in + (2 * ow + px)
            take = cand > best                       # strict '>' -> first max wins
            best_idx = jnp.where(take, cidx, best_idx)
            best = jnp.where(take, cand, best)
        out_ref[...] = best[None]
        idx_ref[...] = best_idx[None]
    return kernel


def _bn_relu_pool(y4, scale, shift, w_in):
    # y4: (N*4, Ho, Wo, C); dim0 = image*4 + window_phase (phase = 2*py + px)
    n4, ho, wo, c = y4.shape
    n = n4 // 4
    t_ho = _largest_divisor_leq(ho, max(1, 512 // max(wo, 1)))
    pooled, idx = pl.pallas_call(
        _make_bn_relu_pool_kernel(w_in),
        grid=(n, ho // t_ho),
        in_specs=[pl.BlockSpec((4, t_ho, wo, c), lambda i, t: (i, t, 0, 0)),
                  pl.BlockSpec((1, c), lambda i, t: (0, 0)),
                  pl.BlockSpec((1, c), lambda i, t: (0, 0))],
        out_specs=(pl.BlockSpec((1, t_ho, wo, c), lambda i, t: (i, t, 0, 0)),
                   pl.BlockSpec((1, t_ho, wo, c), lambda i, t: (i, t, 0, 0))),
        out_shape=(jax.ShapeDtypeStruct((n, ho, wo, c), jnp.float32),
                   jax.ShapeDtypeStruct((n, ho, wo, c), jnp.int32)),
        compiler_params=pltpu.CompilerParams(
            dimension_semantics=("parallel", "parallel"),
            vmem_limit_bytes=_VMEM_LIMIT),
    )(y4, scale, shift)
    return pooled, idx


# ----------------------------------------------------------------------------
# im2col (XLA-side glue): standard order and pool-phase order (last layer)
# ----------------------------------------------------------------------------
def _im2col(x_nhwc):
    n, h, w, cin = x_nhwc.shape
    xp = jnp.pad(x_nhwc, ((0, 0), (1, 1), (1, 1), (0, 0)))
    taps = [xp[:, dy:dy + h, dx:dx + w, :]
            for dy in range(3) for dx in range(3)]
    return jnp.concatenate(taps, axis=-1).reshape(n * h * w, 9 * cin)


def _im2col_pool_phases(x_nhwc):
    """im2col rows ordered (image, window-phase, oh, ow) for the fused pool."""
    n, h, w, cin = x_nhwc.shape
    ho, wo = h // 2, w // 2
    xp = jnp.pad(x_nhwc, ((0, 0), (1, 1), (1, 1), (0, 0)))
    phases = []
    for py in (0, 1):
        for px in (0, 1):
            taps = [xp[:, py + dy:py + dy + h:2, px + dx:px + dx + w:2, :]
                    for dy in range(3) for dx in range(3)]
            phases.append(jnp.concatenate(taps, axis=-1))    # (N, Ho, Wo, 9Cin)
    p = jnp.stack(phases, axis=1)                            # (N, 4, Ho, Wo, 9Cin)
    return p.reshape(n * 4 * ho * wo, 9 * cin)


# ----------------------------------------------------------------------------
# Encoder forward (mirrors the PyTorch module's return structure)
# ----------------------------------------------------------------------------
def encoder_forward(x_nchw, params, *, eps=1e-5, tile_rows=_TILE_ROWS):
    n, _, h, w = x_nchw.shape
    assert h >= 2 and w >= 2
    n_layers = len(params)
    even = (h % 2 == 0) and (w % 2 == 0)
    ho, wo = h // 2, w // 2
    m_true = n * h * w
    tm = min(tile_rows, _round_up(m_true, 8))

    x = jnp.transpose(x_nchw, (0, 2, 3, 1)).astype(jnp.bfloat16)   # NCHW -> NHWC
    pooled_nhwc = idx_nhwc = None
    c_last = None

    for li, (wgt, b, gamma, beta) in enumerate(params):
        # Conv bias `b` is dropped on purpose: BatchNorm subtracts the
        # per-channel mean immediately after the conv, so it cancels exactly.
        del b
        is_last = li == n_layers - 1
        cin = x.shape[-1]
        cout = wgt.shape[0]
        c_last = cout
        # (Cout, Cin, 3, 3) -> (3, 3, Cin, Cout) -> (9*Cin, Cout), bf16 for MXU
        w9 = jnp.transpose(wgt, (2, 3, 1, 0)).reshape(9 * cin, cout)
        w9 = w9.astype(jnp.bfloat16)
        g32 = gamma.astype(jnp.float32)
        be32 = beta.astype(jnp.float32)

        if is_last and even:
            patches = _im2col_pool_phases(x)
            y, scale, shift = _conv_bn_coeffs(patches, w9, g32, be32,
                                              m_true, eps, tm)
            y4 = y[:m_true].reshape(n * 4, ho, wo, cout)
            pooled_nhwc, idx_nhwc = _bn_relu_pool(y4, scale, shift, w_in=w)
        else:
            patches = _im2col(x)
            y, scale, shift = _conv_bn_coeffs(patches, w9, g32, be32,
                                              m_true, eps, tm)
            out_dtype = jnp.float32 if is_last else jnp.bfloat16
            act = _bn_relu(y, scale, shift, out_dtype, tm)[:m_true]
            x = act.reshape(n, h, w, cout)

    if pooled_nhwc is None:
        # Odd spatial dims: pool the materialized activation (floor semantics),
        # reusing the fused pool kernel with an identity affine (act >= 0).
        a = x[:, :2 * ho, :2 * wo, :]
        phases = jnp.stack([a[:, py::2, px::2, :]
                            for py in (0, 1) for px in (0, 1)], axis=1)
        phases = phases.reshape(n * 4, ho, wo, c_last)
        one = jnp.ones((1, c_last), jnp.float32)
        zero = jnp.zeros((1, c_last), jnp.float32)
        pooled_nhwc, idx_nhwc = _bn_relu_pool(phases, one, zero, w_in=w)

    pooled = jnp.transpose(pooled_nhwc, (0, 3, 1, 2))   # NHWC -> NCHW
    idx = jnp.transpose(idx_nhwc, (0, 3, 1, 2))
    size = (n, c_last, h, w)                            # preMaxPooling.size()
    return (pooled, idx), size


# ----------------------------------------------------------------------------
# Pure-JAX reference (correctness check only)
# ----------------------------------------------------------------------------
def _ref_pre_nhwc(x_nchw, params):
    x = jnp.transpose(x_nchw, (0, 2, 3, 1))
    for (w, b, gamma, beta) in params:
        w_hwio = jnp.transpose(w, (2, 3, 1, 0))
        y = jax.lax.conv_general_dilated(
            x, w_hwio, (1, 1), 'SAME',
            dimension_numbers=('NHWC', 'HWIO', 'NHWC')) + b
        mean = jnp.mean(y, axis=(0, 1, 2), keepdims=True)
        var = jnp.mean((y - mean) ** 2, axis=(0, 1, 2), keepdims=True)
        x = jnp.maximum((y - mean) * jax.lax.rsqrt(var + 1e-5) * gamma + beta,
                        0.0)
    return x


if __name__ == "__main__":
    into, outo, howManyLayers = 4, 8, 2
    N, H, W = 2, 16, 16

    key = jax.random.PRNGKey(0)
    key, kx = jax.random.split(key)
    x = jax.random.normal(kx, (N, into, H, W), jnp.float32)

    params = []
    cin = into
    for _ in range(howManyLayers):
        key, k1, k2 = jax.random.split(key, 3)
        w = jax.random.normal(k1, (outo, cin, 3, 3), jnp.float32) * 0.1
        b = jax.random.normal(k2, (outo,), jnp.float32) * 0.1
        gamma = jnp.ones((outo,), jnp.float32)   # BN default weight
        beta = jnp.zeros((outo,), jnp.float32)   # BN default bias
        params.append((w, b, gamma, beta))
        cin = outo

    (pooled, idx), size = encoder_forward(x, params)
    jax.block_until_ready((pooled, idx))

    # --- correctness vs. plain-JAX f32 reference (kernel math is bf16/f32) ---
    pre_ref = _ref_pre_nhwc(x, params)                               # NHWC f32
    pooled_ref = jax.lax.reduce_window(pre_ref, -jnp.inf, jax.lax.max,
                                       (1, 2, 2, 1), (1, 2, 2, 1), 'VALID')
    pooled_ref = jnp.transpose(pooled_ref, (0, 3, 1, 2))             # NCHW
    np.testing.assert_allclose(np.asarray(pooled), np.asarray(pooled_ref),
                               atol=5e-2, rtol=5e-2)

    # Index semantics: gathering the reference pre-pool tensor at the returned
    # flat indices (h*W + w) must reproduce the pooled maxima.
    flat = jnp.transpose(pre_ref, (0, 3, 1, 2)).reshape(N, outo, H * W)
    gathered = jnp.take_along_axis(flat, idx.reshape(N, outo, -1), axis=2)
    gathered = gathered.reshape(N, outo, H // 2, W // 2)
    np.testing.assert_allclose(np.asarray(gathered), np.asarray(pooled_ref),
                               atol=1e-1, rtol=5e-2)

    assert size == (N, outo, H, W)
    assert pooled.shape == (N, outo, H // 2, W // 2)
    assert idx.shape == (N, outo, H // 2, W // 2)
    assert idx.dtype == jnp.int32

    print("KERNEL_OK")
</pallas_src>

<mosaic_0001>
module attributes {stable_mosaic.version = 11 : i64} {
  func.func @_conv_stats_kernel(%arg0: i32, %arg1: memref<256x36xbf16, #tpu.memory_space<vmem>>, %arg2: memref<36x8xbf16, #tpu.memory_space<vmem>>, %arg3: memref<256x8xbf16, #tpu.memory_space<vmem>>, %arg4: memref<1x8x8xf32, #tpu.memory_space<vmem>>, %arg5: memref<1x8x8xf32, #tpu.memory_space<vmem>>) attributes {dimension_semantics = [#tpu.dimension_semantics<parallel>], iteration_bounds = array<i64: 2>, scalar_prefetch = 0 : i64, scratch_operands = 0 : i64, tpu.core_type = #tpu.core_type<tc>, window_params = [{transform_indices = @transform_0, window_bounds = array<i64: 256, 36>}, {pipeline_mode = #tpu.pipeline_mode<synchronous>, transform_indices = @transform_1, window_bounds = array<i64: 36, 8>}, {transform_indices = @transform_2, window_bounds = array<i64: 256, 8>}, {transform_indices = @transform_3, window_bounds = array<i64: 1, 8, 8>}, {transform_indices = @transform_4, window_bounds = array<i64: 1, 8, 8>}]} {
    %c0 = arith.constant 0 : index
    %c0_0 = arith.constant 0 : index
    %0 = vector.load %arg1[%c0, %c0_0] : memref<256x36xbf16, #tpu.memory_space<vmem>>, vector<256x36xbf16>
    %c0_1 = arith.constant 0 : index
    %c0_2 = arith.constant 0 : index
    %1 = vector.load %arg2[%c0_1, %c0_2] : memref<36x8xbf16, #tpu.memory_space<vmem>>, vector<36x8xbf16>
    %cst = arith.constant dense<0.000000e+00> : vector<256x8xf32>
    %2 = tpu.matmul %0, %1, %cst {dimension_numbers = #tpu.dot_dimension_numbers<[1], [0], [0], [1], [0, 0, 1, 1], [], []>} : vector<256x36xbf16>, vector<36x8xbf16>, vector<256x8xf32> -> vector<256x8xf32>
    %3 = arith.truncf %2 : vector<256x8xf32> to vector<256x8xbf16>
    %c0_3 = arith.constant 0 : index
    %c0_4 = arith.constant 0 : index
    %4 = vector.load %arg3[%c0_3, %c0_4] : memref<256x8xbf16, #tpu.memory_space<vmem>>, vector<256x8xbf16>
    tpu.vector_store %arg3[%c0_3, %c0_4], %3 {strides = array<i32>} : memref<256x8xbf16, #tpu.memory_space<vmem>>, vector<256x8xbf16>,
    %cst_5 = arith.constant dense<0.000000e+00> : vector<8xf32>
    %5 = vector.multi_reduction <add>, %2, %cst_5 [0] : vector<256x8xf32> to vector<8xf32>
    %6 = vector.shape_cast %5 : vector<8xf32> to vector<1x8xf32>
    %7 = arith.mulf %2, %2 : vector<256x8xf32>
    %cst_6 = arith.constant dense<0.000000e+00> : vector<8xf32>
    %8 = vector.multi_reduction <add>, %7, %cst_6 [0] : vector<256x8xf32> to vector<8xf32>
    %9 = vector.shape_cast %8 : vector<8xf32> to vector<1x8xf32>
    %10 = vector.shape_cast %6 : vector<1x8xf32> to vector<1x1x8xf32>
    %11 = vector.broadcast %10 : vector<1x1x8xf32> to vector<1x8x8xf32>
    %c0_7 = arith.constant 0 : index
    %c0_8 = arith.constant 0 : index
    %c0_9 = arith.constant 0 : index
    %12 = vector.load %arg4[%c0_7, %c0_8, %c0_9] : memref<1x8x8xf32, #tpu.memory_space<vmem>>, vector<1x8x8xf32>
    tpu.vector_store %arg4[%c0_7, %c0_8, %c0_9], %11 {strides = array<i32>} : memref<1x8x8xf32, #tpu.memory_space<vmem>>, vector<1x8x8xf32>,
    %13 = vector.shape_cast %9 : vector<1x8xf32> to vector<1x1x8xf32>
    %14 = vector.broadcast %13 : vector<1x1x8xf32> to vector<1x8x8xf32>
    %c0_10 = arith.constant 0 : index
    %c0_11 = arith.constant 0 : index
    %c0_12 = arith.constant 0 : index
    %15 = vector.load %arg5[%c0_10, %c0_11, %c0_12] : memref<1x8x8xf32, #tpu.memory_space<vmem>>, vector<1x8x8xf32>
    tpu.vector_store %arg5[%c0_10, %c0_11, %c0_12], %14 {strides = array<i32>} : memref<1x8x8xf32, #tpu.memory_space<vmem>>, vector<1x8x8xf32>,
    return
  }
  func.func @transform_0(%arg0: i32) -> (i32, i32) {
    %c0_i32 = arith.constant 0 : i32
    %c0_i32_0 = arith.constant 0 : i32
    return %arg0, %c0_i32 : i32, i32
  }
  func.func @transform_1(%arg0: i32) -> (i32, i32) {
    %c0_i32 = arith.constant 0 : i32
    %c0_i32_0 = arith.constant 0 : i32
    %c0_i32_1 = arith.constant 0 : i32
    return %c0_i32, %c0_i32_0 : i32, i32
  }
  func.func @transform_2(%arg0: i32) -> (i32, i32) {
    %c0_i32 = arith.constant 0 : i32
    %c0_i32_0 = arith.constant 0 : i32
    return %arg0, %c0_i32 : i32, i32
  }
  func.func @transform_3(%arg0: i32) -> (i32, i32, i32) {
    %c0_i32 = arith.constant 0 : i32
    %c0_i32_0 = arith.constant 0 : i32
    %c0_i32_1 = arith.constant 0 : i32
    return %arg0, %c0_i32, %c0_i32_0 : i32, i32, i32
  }
  func.func @transform_4(%arg0: i32) -> (i32, i32, i32) {
    %c0_i32 = arith.constant 0 : i32
    %c0_i32_0 = arith.constant 0 : i32
    %c0_i32_1 = arith.constant 0 : i32
    return %arg0, %c0_i32, %c0_i32_0 : i32, i32, i32
  }
}

</mosaic_0001>

<bundles_post_ra>
// kernel: tpu_custom_call.1
= control target key start
LH: loop header
LB: loop body
LE: loop exit
PB: predicated region body
PF: predicated region fallthrough
CT: control target
= control target key end

     0   :  { %10 = vsyncpa [#allocation3], 0  ;;  %s1853_s0 = inlined_call_operand.vmem [shape: bf16[512,36], index: 0, kind: input, shape index: {}]   ;;  %s1854_s1 = inlined_call_operand.vmem [shape: bf16[36,8], index: 1, kind: input, shape index: {}]   ;;  %s1855_s2 = inlined_call_operand.vmem [shape: bf16[512,8], index: 2, kind: output, shape index: {0}]   ;;  %s1856_s3 = inlined_call_operand.hbm [shape: f32[2,8,8], index: 3, kind: output, shape index: {1}]   ;;  %s1857_s4 = inlined_call_operand.hbm [shape: f32[2,8,8], index: 4, kind: output, shape index: {2}]  }
   0x1   :  { %12 = vsyncpa [#allocation3 + $0x1], 0 }
   0x2   :  { %13 = vsyncpa [#allocation5], 0 }
   0x3   :  { %15 = vsyncpa [#allocation5 + $0x1], 0  ;;  %s1422_s15 = smov 0   ;;  %s1424_s16 = smov 0  }
   0x4   :  { %s1426_s17 = smov 0   ;;  %s1428_s18 = smov 0  }
   0x5 LB: > { %s1443_s19 = sadd.s32 4294967295, %s1393_s18   ;;  %s1060_s20 = sadd.s32 4294967294, %s1393_s18   ;;  %s1393_s18 = sphi %s1428_s18, %s1863_s18   ;;  %s1389_s17 = sphi %s1426_s17, %s1862_s17   ;;  %s1385_s16 = sphi %s1424_s16, %s1861_s16   ;;  %s1381_s15 = sphi %s1422_s15, %s1860_s15  }
   0x6   : > { %s1447_s21 = sadd.s32 1, %s1393_s18   ;;  %s101_s22 = sadd.s32 1, %s1389_s17 }
   0x7   : > { %s98_s23 = ssub.s32 %s1393_s18, %s1447_s21  ;;  %p111_p0 = scmp.ne.s32.totalorder %s1389_s17, %s1385_s16 }
   0x8   : > { %p99_p1 = scmp.eq.s32.totalorder %s98_s23, 0  ;;  %p112_p2 = scmp.eq.s32.totalorder %s1443_s19, 1 }
   0x9   : > { %p117_p3 = scmp.ne.s32.totalorder %s1385_s16, %s1381_s15  ;;  %p118_p4 = scmp.eq.s32.totalorder %s1060_s20, 1 }
   0xa   : > { %s1458_s24 = scalar_select %p99_p1, %s1389_s17, %s101_s22  }
   0xb   : > { %p1460_p5 = por %p112_p2, %p111_p0  ;;  %p1464_p6 = por %p118_p4, %p117_p3 }
   0xc   : > { %p1063_p7 = scmp.ge.s32.totalorder %s1393_s18, 1  ;;  %p174_p8 = scmp.lt.s32.totalorder %s1393_s18, 3 }
   0xe   : > { %p175_p9 = pnand %p1063_p7, %p174_p8 }
   0xf   : > { %s1066_s5 = sshll.u32 (!%p175_p9), %s1443_s19, 5  ;;  %s1769_s20 = sand.u32 (!%p175_p9), 1, %s1385_s16  }
  0x10   : > { %178 = sbr.rel (%p175_p9) target bundleno = 343 (0x157), region = 28  ;;  %p211_p10 = scmp.lt.s32.totalorder (!%p175_p9), %s1066_s5, 63 }
  0x11   : > { %s1064_s22 = sshll.u32 (!%p175_p9), %s1769_s20, 3  ;;  %s1139_s23 = sshll.u32 (!%p175_p9), %s1443_s19, 7 }
  0x12   : > { %s202_s27 = scalar_lea.vmem (!%p175_p9), [#allocation2], %s1064_s22  ;;  %s1774_s29 = scalar_lea.vmem (!%p175_p9), [#allocation4], %s1064_s22 }
  0x13   : > { %s931_s28 = sshll.u32 (!%p175_p9), %s202_s27, 4  ;;  %s944_s30 = sshll.u32 (!%p175_p9), %s1774_s29, 4  ;;  %s1782_s28 = int_to_ptr.vmem [resolvable:$true] %s931_s28  ;;  %s1790_s30 = int_to_ptr.vmem [resolvable:$true] %s944_s30 }
  0x14   : > { %s1780_s7 = scalar_lea.hbm (!%p175_p9), %s1856_s3, %s1139_s23  ;;  %s1788_s9 = scalar_lea.hbm (!%p175_p9), %s1857_s4, %s1139_s23 }
  0x15   : > { %v1284_v0 = vld [vmem:[%s1854_s1 + $0x10] ss:$0 sps:$4 sm:$0x33]   ;;  %vm404_vm0 = vcmask 1041408   ;;  %v1285_v1 = vld [vmem:[%s1854_s1 + $0x8] sm:$0xff]   ;;  %v1286_v3 = vld [vmem:[%s1854_s1] sm:$0xff]  }
  0x16   : > { %1238 = vmatprep.subr.msk.bf16.mxu0 %vm404_vm0, %v1284_v0  ;;  %v406_v2 = vsel %vm404_vm0, %v1284_v0, 0  ;;  %1239 = vmatprep.subr.msk.bf16.mxu1 %vm404_vm0, %v1284_v0  ;;  %s1865_s5 = smov (!%p211_p10, %s1066_s5), 63  ;;  %vm355_vm1 = vcmask 293888   ;;  %vm697_vm2 = vcmask 60416   ;;  %vm730_vm3 = vcmask 64512   ;;  %s909_s10 = scalar_lea.sflag [#allocation3], %s1769_s20 }
  0x17   : > { %1195 = vmatpush3.bf16.msra.mxu0 %v406_v2  ;;  %1235 = vmatpush3.bf16.msra.mxu1 %v406_v2  ;;  %s1067_s8 = sshll.u32 %s1865_s5, 2  ;;  %s1395_s12 = smov [#allocation2]  }
  0x18   : > { %1196 = vmatprep.subr.bf16.mxu0 %v1285_v1  ;;  %1233 = vmatprep.subr.bf16.mxu1 %v1285_v1  ;;  %s1488_s11 = scalar_lea.vmem %s1853_s0, %s1067_s8  ;;  %s1527_s14 = scalar_lea.vmem %s1855_s2, %s1067_s8 }
  0x19   : > { %v1287_v4 = vld [vmem:[%s1488_s11] sm:$0xff]   ;;  %v1288_v5 = vld [vmem:[%s1488_s11 + $0x8] sm:$0xff]   ;;  %v1289_v6 = vld [vmem:[%s1488_s11 + $0x10] sm:$0xff]   ;;  %s1307_s13 = sshll.u32 %s1395_s12, 4  ;;  %s1308_s13 = int_to_ptr.vmem [resolvable:$false] %s1307_s13 }
  0x1a   : > { %1200 = vmatprep.mubr.msk.bf16.mxu0 %vm355_vm1, %v1287_v4  ;;  %v1290_v7 = vld [vmem:[%s1488_s11 + $0x18] sm:$0xff]   ;;  %v1291_v8 = vld [vmem:[%s1488_s11 + $0x20] sm:$0xff]   ;;  %v1296_v10 = vld [vmem:[%s1488_s11 + $0x48] sm:$0xff]   ;;  %p1310_p0 = scmp.lt.s32.totalorder %s1782_s28, %s1308_s13 }
  0x1b   : > { %1197 = vmatpush3.bf16.msra.mxu0 %v1285_v1  ;;  %1236 = vmatpush3.bf16.msra.mxu1 %v1285_v1  ;;  %v1295_v9 = vld [vmem:[%s1488_s11 + $0x40] sm:$0xff]   ;;  %v1297_v11 = vld [vmem:[%s1488_s11 + $0x50] sm:$0xff]   ;;  %v1298_v12 = vld [vmem:[%s1488_s11 + $0x58] sm:$0xff]  }
  0x1c   : > { %1198 = vmatprep.subr.bf16.mxu0 %v1286_v3  ;;  %1234 = vmatprep.subr.bf16.mxu1 %v1286_v3  ;;  %v1299_v13 = vld [vmem:[%s1488_s11 + $0x60] sm:$0xff]   ;;  %v1292_v14 = vld [vmem:[%s1488_s11 + $0x28] sm:$0xff]   ;;  %v1293_v15 = vld [vmem:[%s1488_s11 + $0x30] sm:$0xff]  }
  0x1d   : > { %1216 = vmatprep.mubr.msk.bf16.mxu1 %vm355_vm1, %v1295_v9  ;;  %v1300_v16 = vld [vmem:[%s1488_s11 + $0x68] sm:$0xff]   ;;  %v1301_v17 = vld [vmem:[%s1488_s11 + $0x70] sm:$0xff]   ;;  %v1294_v18 = vld [vmem:[%s1488_s11 + $0x38] sm:$0xff]  }
  0x1e   : > { %v1302_v19 = vld [vmem:[%s1488_s11 + $0x78] sm:$0xff]   ;;  %s1303_s11 = scalar_lea.vmem %s1782_s28, 128 }
  0x1f   : > { %1199 = vmatpush3.bf16.msra.mxu0 %v1286_v3  ;;  %1237 = vmatpush3.bf16.msra.mxu1 %v1286_v3  ;;  %p1304_p11 = scmp.ne.s32.totalorder %s1782_s28, %s1303_s11 }
  0x21   : > { %p1305_p12 = pnand %p1304_p11, %p1460_p5 }
  0x22   : > { %1201 = vmatmul.mubr.msk.bf16.vlgmr.msra.gmra.mxu0 %vm355_vm1, %v1288_v5  ;;  %1217 = vmatmul.mubr.msk.bf16.vlgmr.msra.gmra.mxu1 %vm355_vm1, %v1296_v10 }
  0x23   : > { %1204 = vmatprep.mubr.msk.bf16.mxu0 %vm355_vm1, %v1289_v6  ;;  %1220 = vmatprep.mubr.msk.bf16.mxu1 %vm355_vm1, %v1297_v11  ;;  %p1306_p13 = pneg %p1305_p12 }
  0x2a   : > { %1205 = vmatmul.mubr.msk.bf16.gmra.mxu0 %vm355_vm1, %v1290_v7  ;;  %1221 = vmatmul.mubr.msk.bf16.gmra.mxu1 %vm355_vm1, %v1298_v12 }
  0x2b   : > { %1208 = vmatprep.mubr.msk.bf16.mxu0 %vm355_vm1, %v1291_v8  ;;  %1224 = vmatprep.mubr.msk.bf16.mxu1 %vm355_vm1, %v1299_v13 }
  0x32   : > { %1209 = vmatmul.mubr.msk.bf16.gmra.mxu0 %vm355_vm1, %v1292_v14  ;;  %1225 = vmatmul.mubr.msk.bf16.gmra.mxu1 %vm355_vm1, %v1300_v16 }
  0x33   : > { %1212 = vmatprep.mubr.msk.bf16.mxu0 %vm355_vm1, %v1293_v15  ;;  %1228 = vmatprep.mubr.msk.bf16.mxu1 %vm355_vm1, %v1301_v17 }
  0x3a   : > { %1213 = vmatmul.mubr.msk.bf16.gmra.mxu0 %vm355_vm1, %v1294_v18  ;;  %1229 = vmatmul.mubr.msk.bf16.gmra.mxu1 %vm355_vm1, %v1302_v19 }
  0xe2   : > { %v1202_v20 = vpop.f32.mrf.mxu0  ;;  %v1533_v29 = vpop.f32.mrf.mxu1 }
  0xe3   : > { %v1145_v21 = vpack.c.bf16 %v1202_v20, %v1202_v20  ;;  %v802_v27 = vmul.f32 %v1202_v20, %v1202_v20  ;;  %v734_v34 = vsel %vm730_vm3, %v1202_v20, 0.0  ;;  %v1161_v37 = vpack.c.bf16 %v1533_v29, %v1533_v29 }
  0xe4   : > { %v442_v22 = vpop.f32.mrf.mxu0  ;;  %v1542_v38 = vpop.f32.mrf.mxu1 }
  0xe5   : > { %700 = vst.msk [vmem:[%s1527_s14 + $0x8] sm:$0xf] %vm697_vm2, %v1145_v21  ;;  %v1143_v23 = vpack.c.bf16 %v442_v22, %v442_v22  ;;  %v800_v25 = vmul.f32 %v442_v22, %v442_v22  ;;  %v731_v30 = vsel %vm730_vm3, %v442_v22, 0.0  ;;  %716 = vst.msk [vmem:[%s1527_s14 + $0x48] sm:$0xf] %vm697_vm2, %v1161_v37  ;;  %v1159_v46 = vpack.c.bf16 %v1542_v38, %v1542_v38 }
  0xe6   : > { %v1203_v24 = vpop.f32.mrf.mxu0  ;;  %v1552_v47 = vpop.f32.mrf.mxu1  ;;  %v835_v48 = vsel %vm730_vm3, %v802_v27, 0.0 }
  0xe7   : > { %698 = vst.msk [vmem:[%s1527_s14] sm:$0xf] %vm697_vm2, %v1143_v23  ;;  %v1146_v26 = vpack.c.bf16 %v1203_v24, %v1203_v24  ;;  %v832_v39 = vsel %vm730_vm3, %v800_v25, 0.0  ;;  %v803_v40 = vmul.f32 %v1203_v24, %v1203_v24  ;;  %v736_v49 = vsel %vm730_vm3, %v1203_v24, 0.0  ;;  %714 = vst.msk [vmem:[%s1527_s14 + $0x40] sm:$0xf] %vm697_vm2, %v1159_v46 }
  0xe8   : > { %v445_v28 = vpop.f32.mrf.mxu0  ;;  %v1560_v55 = vpop.f32.mrf.mxu1  ;;  %v1162_v63 = vpack.c.bf16 %v1552_v47, %v1552_v47 }
  0xe9   : > { %701 = vst.msk [vmem:[%s1527_s14 + $0xc] sm:$0xf] %vm697_vm2, %v1146_v26  ;;  %v1144_v31 = vpack.c.bf16 %v445_v28, %v445_v28  ;;  %v732_v32 = vsel %vm730_vm3, %v445_v28, 0.0  ;;  %v801_v33 = vmul.f32 %v445_v28, %v445_v28  ;;  %v837_v56 = vsel %vm730_vm3, %v803_v40, 0.0 }
  0xea   : > { %v733_v35 = vadd.f32 %v732_v32, %v731_v30  ;;  %v1206_v36 = vpop.f32.mrf.mxu0  ;;  %v1568_v0 = vpop.f32.mrf.mxu1  ;;  %717 = vst.msk [vmem:[%s1527_s14 + $0x4c] sm:$0xf] %vm697_vm2, %v1162_v63  ;;  %v1160_v16 = vpack.c.bf16 %v1560_v55, %v1560_v55 }
  0xeb   : > { %699 = vst.msk [vmem:[%s1527_s14 + $0x4] sm:$0xf] %vm697_vm2, %v1144_v31  ;;  %v833_v41 = vsel %vm730_vm3, %v801_v33, 0.0  ;;  %v1149_v42 = vpack.c.bf16 %v1206_v36, %v1206_v36  ;;  %v806_v59 = vmul.f32 %v1206_v36, %v1206_v36  ;;  %v742_v9 = vsel %vm730_vm3, %v1206_v36, 0.0 }
  0xec   : > { %v735_v43 = vadd.f32 %v734_v34, %v733_v35  ;;  %v834_v44 = vadd.f32 %v833_v41, %v832_v39  ;;  %v458_v45 = vpop.f32.mrf.mxu0  ;;  %v1576_v8 = vpop.f32.mrf.mxu1  ;;  %715 = vst.msk [vmem:[%s1527_s14 + $0x44] sm:$0xf] %vm697_vm2, %v1160_v16  ;;  %v1165_v34 = vpack.c.bf16 %v1568_v0, %v1568_v0 }
  0xed   : > { %704 = vst.msk [vmem:[%s1527_s14 + $0x18] sm:$0xf] %vm697_vm2, %v1149_v42  ;;  %v1147_v50 = vpack.c.bf16 %v458_v45, %v458_v45  ;;  %v804_v51 = vmul.f32 %v458_v45, %v458_v45  ;;  %v738_v57 = vsel %vm730_vm3, %v458_v45, 0.0  ;;  %v843_v18 = vsel %vm730_vm3, %v806_v59, 0.0 }
  0xee   : > { %v836_v52 = vadd.f32 %v835_v48, %v834_v44  ;;  %v737_v53 = vadd.f32 %v736_v49, %v735_v43  ;;  %v1207_v54 = vpop.f32.mrf.mxu0  ;;  %v1584_v17 = vpop.f32.mrf.mxu1  ;;  %720 = vst.msk [vmem:[%s1527_s14 + $0x58] sm:$0xf] %vm697_vm2, %v1165_v34 }
  0xef   : > { %702 = vst.msk [vmem:[%s1527_s14 + $0x10] sm:$0xf] %vm697_vm2, %v1147_v50  ;;  %v1150_v58 = vpack.c.bf16 %v1207_v54, %v1207_v54  ;;  %v839_v1 = vsel %vm730_vm3, %v804_v51, 0.0  ;;  %v807_v10 = vmul.f32 %v1207_v54, %v1207_v54  ;;  %v744_v19 = vsel %vm730_vm3, %v1207_v54, 0.0 }
  0xf0   : > { %v739_v60 = vadd.f32 %v738_v57, %v737_v53  ;;  %v838_v61 = vadd.f32 %v837_v56, %v836_v52  ;;  %v461_v62 = vpop.f32.mrf.mxu0  ;;  %v1592_v25 = vpop.f32.mrf.mxu1  ;;  %v1163_v53 = vpack.c.bf16 %v1576_v8, %v1576_v8 }
  0xf1   : > { %705 = vst.msk [vmem:[%s1527_s14 + $0x1c] sm:$0xf] %vm697_vm2, %v1150_v58  ;;  %v1148_v2 = vpack.c.bf16 %v461_v62, %v461_v62  ;;  %v740_v3 = vsel %vm730_vm3, %v461_v62, 0.0  ;;  %v805_v4 = vmul.f32 %v461_v62, %v461_v62  ;;  %v845_v26 = vsel %vm730_vm3, %v807_v10, 0.0 }
  0xf2   : > { %v840_v5 = vadd.f32 %v839_v1, %v838_v61  ;;  %v741_v6 = vadd.f32 %v740_v3, %v739_v60  ;;  %v1210_v7 = vpop.f32.mrf.mxu0  ;;  %v1600_v35 = vpop.f32.mrf.mxu1  ;;  %718 = vst.msk [vmem:[%s1527_s14 + $0x50] sm:$0xf] %vm697_vm2, %v1163_v53  ;;  %v819_v53 = vmul.f32 %v1552_v47, %v1552_v47 }
  0xf3   : > { %703 = vst.msk [vmem:[%s1527_s14 + $0x14] sm:$0xf] %vm697_vm2, %v1148_v2  ;;  %v841_v11 = vsel %vm730_vm3, %v805_v4, 0.0  ;;  %v1153_v12 = vpack.c.bf16 %v1210_v7, %v1210_v7  ;;  %v810_v30 = vmul.f32 %v1210_v7, %v1210_v7  ;;  %v750_v45 = vsel %vm730_vm3, %v1210_v7, 0.0 }
  0xf4   : > { %v743_v13 = vadd.f32 %v742_v9, %v741_v6  ;;  %v842_v14 = vadd.f32 %v841_v11, %v840_v5  ;;  %v474_v15 = vpop.f32.mrf.mxu0  ;;  %v1608_v44 = vpop.f32.mrf.mxu1  ;;  %v1166_v9 = vpack.c.bf16 %v1584_v17, %v1584_v17 }
  0xf5   : > { %708 = vst.msk [vmem:[%s1527_s14 + $0x28] sm:$0xf] %vm697_vm2, %v1153_v12  ;;  %v1151_v20 = vpack.c.bf16 %v474_v15, %v474_v15  ;;  %v808_v21 = vmul.f32 %v474_v15, %v474_v15  ;;  %v746_v27 = vsel %vm730_vm3, %v474_v15, 0.0  ;;  %v851_v56 = vsel %vm730_vm3, %v810_v30, 0.0 }
  0xf6   : > { %v844_v22 = vadd.f32 %v843_v18, %v842_v14  ;;  %v745_v23 = vadd.f32 %v744_v19, %v743_v13  ;;  %v1211_v24 = vpop.f32.mrf.mxu0  ;;  %v1616_v54 = vpop.f32.mrf.mxu1  ;;  %721 = vst.msk [vmem:[%s1527_s14 + $0x5c] sm:$0xf] %vm697_vm2, %v1166_v9  ;;  %v816_v30 = vmul.f32 %v1542_v38, %v1542_v38 }
  0xf7   : > { %706 = vst.msk [vmem:[%s1527_s14 + $0x20] sm:$0xf] %vm697_vm2, %v1151_v20  ;;  %v1154_v28 = vpack.c.bf16 %v1211_v24, %v1211_v24  ;;  %v847_v36 = vsel %vm730_vm3, %v808_v21, 0.0  ;;  %v811_v46 = vmul.f32 %v1211_v24, %v1211_v24  ;;  %v752_v57 = vsel %vm730_vm3, %v1211_v24, 0.0 }
  0xf8   : > { %v747_v31 = vadd.f32 %v746_v27, %v745_v23  ;;  %v846_v32 = vadd.f32 %v845_v26, %v844_v22  ;;  %v477_v33 = vpop.f32.mrf.mxu0  ;;  %v1624_v63 = vpop.f32.mrf.mxu1  ;;  %v1164_v22 = vpack.c.bf16 %v1592_v25, %v1592_v25  ;;  %v1169_v26 = vpack.c.bf16 %v1600_v35, %v1600_v35 }
  0xf9   : > { %709 = vst.msk [vmem:[%s1527_s14 + $0x2c] sm:$0xf] %vm697_vm2, %v1154_v28  ;;  %v1152_v37 = vpack.c.bf16 %v477_v33, %v477_v33  ;;  %v748_v39 = vsel %vm730_vm3, %v477_v33, 0.0  ;;  %v809_v40 = vmul.f32 %v477_v33, %v477_v33  ;;  %v853_v1 = vsel %vm730_vm3, %v811_v46, 0.0 }
  0xfa   : > { %v848_v41 = vadd.f32 %v847_v36, %v846_v32  ;;  %v749_v42 = vadd.f32 %v748_v39, %v747_v31  ;;  %v1214_v43 = vpop.f32.mrf.mxu0  ;;  %v1632_v10 = vpop.f32.mrf.mxu1  ;;  %719 = vst.msk [vmem:[%s1527_s14 + $0x54] sm:$0xf] %vm697_vm2, %v1164_v22  ;;  %v1167_v31 = vpack.c.bf16 %v1608_v44, %v1608_v44  ;;  %724 = vst.msk [vmem:[%s1527_s14 + $0x68] sm:$0xf] %vm697_vm2, %v1169_v26  ;;  %v863_v46 = vsel %vm730_vm3, %v816_v30, 0.0 }
  0xfb   : > { %707 = vst.msk [vmem:[%s1527_s14 + $0x24] sm:$0xf] %vm697_vm2, %v1152_v37  ;;  %v849_v48 = vsel %vm730_vm3, %v809_v40, 0.0  ;;  %v1157_v49 = vpack.c.bf16 %v1214_v43, %v1214_v43  ;;  %v814_v4 = vmul.f32 %v1214_v43, %v1214_v43  ;;  %v758_v19 = vsel %vm730_vm3, %v1214_v43, 0.0 }
  0xfc   : > { %v751_v50 = vadd.f32 %v750_v45, %v749_v42  ;;  %v850_v51 = vadd.f32 %v849_v48, %v848_v41  ;;  %v490_v52 = vpop.f32.mrf.mxu0  ;;  %v1640_v18 = vpop.f32.mrf.mxu1  ;;  %v762_v37 = vsel %vm730_vm3, %v1542_v38, 0.0  ;;  %v817_v39 = vmul.f32 %v1560_v55, %v1560_v55  ;;  %722 = vst.msk [vmem:[%s1527_s14 + $0x60] sm:$0xf] %vm697_vm2, %v1167_v31 }
  0xfd   : > { %712 = vst.msk [vmem:[%s1527_s14 + $0x38] sm:$0xf] %vm697_vm2, %v1157_v49  ;;  %v1155_v58 = vpack.c.bf16 %v490_v52, %v490_v52  ;;  %v812_v59 = vmul.f32 %v490_v52, %v490_v52  ;;  %v754_v2 = vsel %vm730_vm3, %v490_v52, 0.0  ;;  %v859_v27 = vsel %vm730_vm3, %v814_v4, 0.0 }
  0xfe   : > { %v852_v60 = vadd.f32 %v851_v56, %v850_v51  ;;  %v753_v61 = vadd.f32 %v752_v57, %v751_v50  ;;  %v1215_v62 = vpop.f32.mrf.mxu0  ;;  %v1660_v34 = vpop.f32.mrf.mxu1  ;;  %v1170_v40 = vpack.c.bf16 %v1616_v54, %v1616_v54  ;;  %v1168_v43 = vpack.c.bf16 %v1624_v63, %v1624_v63 }
  0xff   : > { %710 = vst.msk [vmem:[%s1527_s14 + $0x30] sm:$0xf] %vm697_vm2, %v1155_v58  ;;  %v1158_v3 = vpack.c.bf16 %v1215_v62, %v1215_v62  ;;  %v855_v11 = vsel %vm730_vm3, %v812_v59, 0.0  ;;  %v815_v20 = vmul.f32 %v1215_v62, %v1215_v62  ;;  %v760_v28 = vsel %vm730_vm3, %v1215_v62, 0.0 }
 0x100   : > { %v755_v5 = vadd.f32 %v754_v2, %v753_v61  ;;  %v854_v6 = vadd.f32 %v853_v1, %v852_v60  ;;  %v493_v7 = vpop.f32.mrf.mxu0  ;;  %v818_v45 = vmul.f32 %v1533_v29, %v1533_v29  ;;  %v764_v38 = vsel %vm730_vm3, %v1560_v55, 0.0  ;;  %725 = vst.msk [vmem:[%s1527_s14 + $0x6c] sm:$0xf] %vm697_vm2, %v1170_v40  ;;  %723 = vst.msk [vmem:[%s1527_s14 + $0x64] sm:$0xf] %vm697_vm2, %v1168_v43  ;;  %v1684_v51 = vpop.f32.mrf.mxu1 }
 0x101   : > { %713 = vst.msk [vmem:[%s1527_s14 + $0x3c] sm:$0xf] %vm697_vm2, %v1158_v3  ;;  %v1156_v12 = vpack.c.bf16 %v493_v7, %v493_v7  ;;  %v756_v13 = vsel %vm730_vm3, %v493_v7, 0.0  ;;  %v813_v14 = vmul.f32 %v493_v7, %v493_v7  ;;  %v861_v36 = vsel %vm730_vm3, %v815_v20, 0.0 }
 0x102   : > { %v856_v15 = vadd.f32 %v855_v11, %v854_v6  ;;  %v757_v16 = vadd.f32 %v756_v13, %v755_v5  ;;  %v1173_v48 = vpack.c.bf16 %v1632_v10, %v1632_v10  ;;  %v766_v52 = vsel %vm730_vm3, %v1533_v29, 0.0 }
 0x103   : > { %711 = vst.msk [vmem:[%s1527_s14 + $0x34] sm:$0xf] %vm697_vm2, %v1156_v12  ;;  %v857_v21 = vsel %vm730_vm3, %v813_v14, 0.0  ;;  %v865_v55 = vsel %vm730_vm3, %v817_v39, 0.0  ;;  %v1171_v56 = vpack.c.bf16 %v1640_v18, %v1640_v18  ;;  %v1174_v59 = vpack.c.bf16 %v1660_v34, %v1660_v34 }
 0x104   : > { %v759_v23 = vadd.f32 %v758_v19, %v757_v16  ;;  %v858_v24 = vadd.f32 %v857_v21, %v856_v15  ;;  %728 = vst.msk [vmem:[%s1527_s14 + $0x78] sm:$0xf] %vm697_vm2, %v1173_v48  ;;  %v867_v60 = vsel %vm730_vm3, %v818_v45, 0.0  ;;  %v768_v29 = vsel %vm730_vm3, %v1552_v47, 0.0 }
 0x105   : > { %v820_v61 = vmul.f32 %v1576_v8, %v1576_v8  ;;  %726 = vst.msk [vmem:[%s1527_s14 + $0x70] sm:$0xf] %vm697_vm2, %v1171_v56  ;;  %v1172_v62 = vpack.c.bf16 %v1684_v51, %v1684_v51  ;;  %729 = vst.msk [vmem:[%s1527_s14 + $0x7c] sm:$0xf] %vm697_vm2, %v1174_v59  ;;  %v869_v3 = vsel %vm730_vm3, %v819_v53, 0.0  ;;  %v770_v4 = vsel %vm730_vm3, %v1576_v8, 0.0 }
 0x106   : > { %v761_v32 = vadd.f32 %v760_v28, %v759_v23  ;;  %v860_v33 = vadd.f32 %v859_v27, %v858_v24  ;;  %v821_v47 = vmul.f32 %v1592_v25, %v1592_v25  ;;  %v822_v7 = vmul.f32 %v1568_v0, %v1568_v0 }
 0x107   : > { %727 = vst.msk [vmem:[%s1527_s14 + $0x74] sm:$0xf] %vm697_vm2, %v1172_v62  ;;  %v871_v9 = vsel %vm730_vm3, %v820_v61, 0.0  ;;  %v772_v11 = vsel %vm730_vm3, %v1592_v25, 0.0  ;;  %v774_v8 = vsel %vm730_vm3, %v1568_v0, 0.0  ;;  %v823_v14 = vmul.f32 %v1584_v17, %v1584_v17  ;;  %s1309_s14 = scalar_lea.vmem %s1308_s13, 256 }
 0x108   : > { %v862_v41 = vadd.f32 %v861_v36, %v860_v33  ;;  %v763_v42 = vadd.f32 %v762_v37, %v761_v32  ;;  %v873_v15 = vsel %vm730_vm3, %v821_v47, 0.0  ;;  %v875_v20 = vsel %vm730_vm3, %v822_v7, 0.0  ;;  %p1311_p1 = scmp.lt.s32.totalorder %s1309_s14, %s1303_s11 }
 0x109   : > { %v776_v21 = vsel %vm730_vm3, %v1584_v17, 0.0  ;;  %v824_v25 = vmul.f32 %v1608_v44, %v1608_v44  ;;  %v877_v24 = vsel %vm730_vm3, %v823_v14, 0.0  ;;  %v778_v0 = vsel %vm730_vm3, %v1608_v44, 0.0 }
 0x10a   : > { %v765_v49 = vadd.f32 %v764_v38, %v763_v42  ;;  %v864_v50 = vadd.f32 %v863_v46, %v862_v41  ;;  %v825_v26 = vmul.f32 %v1624_v63, %v1624_v63  ;;  %v826_v30 = vmul.f32 %v1600_v35, %v1600_v35  ;;  %p1312_p2 = por %p1311_p1, %p1310_p0 }
 0x10b   : > { %v879_v17 = vsel %vm730_vm3, %v824_v25, 0.0  ;;  %v780_v31 = vsel %vm730_vm3, %v1624_v63, 0.0  ;;  %v782_v36 = vsel %vm730_vm3, %v1600_v35, 0.0  ;;  %v827_v44 = vmul.f32 %v1616_v54, %v1616_v54 }
 0x10c   : > { %v767_v57 = vadd.f32 %v766_v52, %v765_v49  ;;  %v866_v58 = vadd.f32 %v865_v55, %v864_v50  ;;  %v881_v37 = vsel %vm730_vm3, %v825_v26, 0.0  ;;  %v883_v41 = vsel %vm730_vm3, %v826_v30, 0.0  ;;  %p1313_p3 = pnand %p1312_p2, %p1306_p13 }
 0x10d   : > { %v784_v42 = vsel %vm730_vm3, %v1616_v54, 0.0  ;;  %v828_v63 = vmul.f32 %v1640_v18, %v1640_v18  ;;  %v885_v46 = vsel %vm730_vm3, %v827_v44, 0.0  ;;  %v786_v35 = vsel %vm730_vm3, %v1640_v18, 0.0 }
 0x10e   : > { %v868_v1 = vadd.f32 %v867_v60, %v866_v58  ;;  %v769_v2 = vadd.f32 %v768_v29, %v767_v57  ;;  %v829_v38 = vmul.f32 %v1684_v51, %v1684_v51  ;;  %v830_v50 = vmul.f32 %v1632_v10, %v1632_v10 }
 0x10f   : > { %v887_v54 = vsel %vm730_vm3, %v828_v63, 0.0  ;;  %v788_v52 = vsel %vm730_vm3, %v1684_v51, 0.0  ;;  %v790_v56 = vsel %vm730_vm3, %v1632_v10, 0.0  ;;  %v831_v18 = vmul.f32 %v1660_v34, %v1660_v34 }
 0x110   : > { %v771_v5 = vadd.f32 %v770_v4, %v769_v2  ;;  %v870_v6 = vadd.f32 %v869_v3, %v868_v1  ;;  %v889_v57 = vsel %vm730_vm3, %v829_v38, 0.0  ;;  %v891_v60 = vsel %vm730_vm3, %v830_v50, 0.0 }
 0x111   : > { %v792_v29 = vsel %vm730_vm3, %v1660_v34, 0.0  ;;  %v893_v10 = vsel %vm730_vm3, %v831_v18, 0.0 }
 0x112   : > { %v872_v12 = vadd.f32 %v871_v9, %v870_v6  ;;  %v773_v13 = vadd.f32 %v772_v11, %v771_v5 }
 0x114   : > { %v775_v16 = vadd.f32 %v774_v8, %v773_v13  ;;  %v874_v19 = vadd.f32 %v873_v15, %v872_v12 }
 0x116   : > { %v876_v22 = vadd.f32 %v875_v20, %v874_v19  ;;  %v777_v23 = vadd.f32 %v776_v21, %v775_v16 }
 0x118   : > { %v779_v27 = vadd.f32 %v778_v0, %v777_v23  ;;  %v878_v28 = vadd.f32 %v877_v24, %v876_v22 }
 0x11a   : > { %v880_v32 = vadd.f32 %v879_v17, %v878_v28  ;;  %v781_v33 = vadd.f32 %v780_v31, %v779_v27 }
 0x11c   : > { %v783_v39 = vadd.f32 %v782_v36, %v781_v33  ;;  %v882_v40 = vadd.f32 %v881_v37, %v880_v32 }
 0x11e   : > { %v884_v43 = vadd.f32 %v883_v41, %v882_v40  ;;  %v785_v45 = vadd.f32 %v784_v42, %v783_v39 }
 0x120   : > { %v787_v48 = vadd.f32 %v786_v35, %v785_v45  ;;  %v886_v49 = vadd.f32 %v885_v46, %v884_v43 }
 0x122   : > { %v888_v53 = vadd.f32 %v887_v54, %v886_v49  ;;  %v789_v55 = vadd.f32 %v788_v52, %v787_v48 }
 0x124   : > { %v791_v58 = vadd.f32 %v790_v56, %v789_v55  ;;  %v890_v59 = vadd.f32 %v889_v57, %v888_v53 }
 0x126   : > { %v793_v61 = vadd.f32 %v792_v29, %v791_v58  ;;  %v892_v51 = vadd.f32 %v891_v60, %v890_v59 }
 0x128   : > { %v794_v62 = vrot.slane %v793_v61, 4  ;;  %v894_v1 = vadd.f32 %v893_v10, %v892_v51 }
 0x12a   : > { %v795_v2 = vadd.f32 %v794_v62, %v793_v61  ;;  %v895_v3 = vrot.slane %v894_v1, 4 }
 0x12c   : > { %v796_v4 = vrot.slane %v795_v2, 2  ;;  %v896_v47 = vadd.f32 %v895_v3, %v894_v1 }
 0x12e   : > { %v797_v5 = vadd.f32 %v796_v4, %v795_v2  ;;  %v897_v6 = vrot.slane %v896_v47, 2 }
 0x130   : > { %v798_v34 = vrot.slane %v797_v5, 1  ;;  %v898_v7 = vadd.f32 %v897_v6, %v896_v47 }
 0x132   : > { %v799_v9 = vadd.f32 %v798_v34, %v797_v5  ;;  %v899_v11 = vrot.slane %v898_v7, 1 }
 0x134   : > { %901 = vst.msk [vmem:[%s202_s27] sm:$0xff] %vm730_vm3, %v799_v9  ;;  %v900_v12 = vadd.f32 %v899_v11, %v898_v7 }
 0x135   : > { %1316 = shalt.err (!%p1313_p3)
}
 0x136   : > { %s1317_s22 = scalar_lea.hbm %s1780_s7, 128  ;;  %s1321_s5 = scalar_lea.hbm %s1856_s3, 256 }
 0x137   : > { %p1318_p4 = scmp.ne.s32.totalorder %s1780_s7, %s1317_s22  ;;  %p1322_p9 = scmp.lt.s32.totalorder %s1780_s7, %s1856_s3 }
 0x138   : > { %p1323_p10 = scmp.lt.s32.totalorder %s1321_s5, %s1317_s22 }
 0x139   : > { %p1319_p7 = pnand %p1318_p4, %p1460_p5 }
 0x13a   : > { %p1324_p11 = por %p1323_p10, %p1322_p9 }
 0x13b   : > { %p1320_p8 = pneg %p1319_p7 }
 0x13d   : > { %p1325_p12 = pnand %p1324_p11, %p1320_p8 }
 0x13f   : > { %1328 = shalt.err (!%p1325_p12)
}
 0x140   : > { %1240 = dma.vmem_to_hbm [thread:$0]  (%p1460_p5), %s1782_s28, 128, %s1780_s7, %s909_s10   ;;  %902 = vst.msk [vmem:[%s1774_s29] sm:$0xff] %vm730_vm3, %v900_v12 }
 0x141   : > { %s914_s8 = scalar_lea.sflag [#allocation5], %s1769_s20  ;;  %s1329_s11 = scalar_lea.vmem %s1790_s30, 128 }
 0x142   : > { %p1330_p13 = scmp.ne.s32.totalorder %s1790_s30, %s1329_s11  ;;  %s1396_s12 = smov [#allocation4]  }
 0x143   : > { %s1333_s13 = sshll.u32 %s1396_s12, 4  ;;  %s1334_s13 = int_to_ptr.vmem [resolvable:$false] %s1333_s13 }
 0x144   : > { %p1331_p0 = pnand %p1330_p13, %p1460_p5  ;;  %s1335_s14 = scalar_lea.vmem %s1334_s13, 256 }
 0x145   : > { %p1336_p2 = scmp.lt.s32.totalorder %s1790_s30, %s1334_s13  ;;  %p1337_p3 = scmp.lt.s32.totalorder %s1335_s14, %s1329_s11 }
 0x146   : > { %p1332_p1 = pneg %p1331_p0 }
 0x147   : > { %p1338_p4 = por %p1337_p3, %p1336_p2 }
 0x149   : > { %p1339_p7 = pnand %p1338_p4, %p1332_p1 }
 0x14b   : > { %1342 = shalt.err (!%p1339_p7)
}
 0x14c   : > { %s1343_s28 = scalar_lea.hbm %s1788_s9, 128  ;;  %s1347_s7 = scalar_lea.hbm %s1857_s4, 256 }
 0x14d   : > { %p1344_p8 = scmp.ne.s32.totalorder %s1788_s9, %s1343_s28  ;;  %p1348_p11 = scmp.lt.s32.totalorder %s1788_s9, %s1857_s4 }
 0x14e   : > { %p1349_p12 = scmp.lt.s32.totalorder %s1347_s7, %s1343_s28 }
 0x14f   : > { %p1345_p9 = pnand %p1344_p8, %p1460_p5 }
 0x150   : > { %p1350_p13 = por %p1349_p12, %p1348_p11 }
 0x151   : > { %p1346_p10 = pneg %p1345_p9 }
 0x153   : > { %p1351_p0 = pnand %p1350_p13, %p1346_p10 }
 0x155   : > { %1354 = shalt.err (!%p1351_p0)
}
 0x156   : > { %1241 = dma.vmem_to_hbm [thread:$0]  (%p1460_p5), %s1790_s30, 128, %s1788_s9, %s914_s8  }
 0x157 PF: > { %p1251_p1 = scmp.ge.s32.totalorder %s1393_s18, 2  ;;  %s964_s23 = sand.u32 1, %s1381_s15  }
 0x158   : > { %s965_s27 = scalar_lea.sflag [#allocation3], %s964_s23 }
 0x159   : > { %p1245_p2 = pnand %p1251_p1, %p1464_p6 }
 0x15b   : > { %p1246_p3 = pneg %p1245_p2 }
 0x15d   : > { %1372 = dma.done.wait (%p1246_p3), %s965_s27, 128  }
 0x15e   : > { %1374 = vsyncadd (%p1246_p3), %s965_s27, 4294967168  ;;  %s974_s5 = scalar_lea.sflag [#allocation5], %s964_s23 }
 0x15f   : > { %1376 = dma.done.wait (%p1246_p3), %s974_s5, 128  }
 0x160   : > { %1378 = vsyncadd (%p1246_p3), %s974_s5, 4294967168  ;;  %p18_p5 = scmp.ge.s32.totalorder %s1447_s21, 4   ;;  %s1860_s15 = smov %s1385_s16 }
 0x161   : > { %s1861_s16 = smov %s1389_s17  ;;  %s1862_s17 = smov %s1458_s24 }
 0x162   : > { %s1863_s18 = smov %s1447_s21  ;;  %20 = sbr.rel (!%p18_p5) target bundleno = 5 (0x5), region = 92 }
 0x167   :  { %979 = vsyncpa [#allocation3], 1 }
 0x168   :  { %981 = vsyncpa [#allocation3 + $0x1], 1 }
 0x169   :  { %982 = vsyncpa [#allocation5], 1 }
 0x16a   :  { %984 = vsyncpa [#allocation5 + $0x1], 1 }

</bundles_post_ra>
